<compile_context>
chip_gen: v7x
topology: tpu7x:2x2x1
jax: 0.10.0
libtpu: 0.0.40
codegen_flags: <defaults>
</compile_context>

<pallas_src>
import functools
import math

import jax
import jax.numpy as jnp
from jax.experimental import pallas as pl
from jax.experimental.pallas import tpu as pltpu

LOG_STD_MAX = 2.0
LOG_STD_MIN = -20.0
_HALF_LOG_2PI = 0.5 * math.log(2.0 * math.pi)
_LOG_2 = math.log(2.0)


def _actor_kernel(*refs, act_limit, deterministic, with_logprob,
                  act_dim, h1_dim, h2_dim):
    # inputs : obs_T, w1, w2, w_head, bias_packed[, noise_T]
    # outputs: act_T[, logp]
    obs_ref, w1_ref, w2_ref, wh_ref, b_ref = refs[:5]
    i = 5
    noise_ref = None
    if not deterministic:
        noise_ref = refs[i]
        i += 1
    act_ref = refs[i]
    i += 1
    logp_ref = refs[i] if with_logprob else None

    obs = obs_ref[...]                                            # (obs_dim, TB)
    b1 = b_ref[0:h1_dim, :]                                       # (h1, 1)
    b2 = b_ref[h1_dim:h1_dim + h2_dim, :]                         # (h2, 1)
    bh = b_ref[h1_dim + h2_dim:h1_dim + h2_dim + 2 * act_dim, :]  # (2*act_dim, 1)

    # --- MLP trunk: Linear -> ReLU -> Linear -> ReLU ---
    h1 = jnp.dot(w1_ref[...], obs, preferred_element_type=jnp.float32) + b1
    h1 = jnp.maximum(h1, 0.0)
    h2 = jnp.dot(w2_ref[...], h1, preferred_element_type=jnp.float32) + b2
    h2 = jnp.maximum(h2, 0.0)

    # --- fused mu / log_std head: one matmul, slice rows ---
    head = jnp.dot(wh_ref[...], h2, preferred_element_type=jnp.float32) + bh
    mu = head[:act_dim, :]                                        # (act_dim, TB)
    log_std = jnp.clip(head[act_dim:, :], LOG_STD_MIN, LOG_STD_MAX)
    std = jnp.exp(log_std)

    # --- rsample (reparameterization) ---
    if deterministic:
        a = mu
    else:
        a = mu + std * noise_ref[...]

    # shared exp(-2|a|), reused by tanh and the softplus correction
    e = jnp.exp(-2.0 * jnp.abs(a))

    if with_logprob:
        if deterministic:
            # pi_action == mu  =>  z == 0 (density at the mean)
            log_prob = -log_std - _HALF_LOG_2PI
        else:
            z = noise_ref[...]            # == (a - mu) / std, no divide needed
            log_prob = -0.5 * z * z - log_std - _HALF_LOG_2PI
        # softplus(-2a) = log(1 + exp(-2|a|)) + max(-2a, 0)   (overflow-safe)
        softplus_m2a = jnp.log(1.0 + e) + jnp.maximum(-2.0 * a, 0.0)
        correction = 2.0 * (_LOG_2 - a - softplus_m2a)
        # single fused cross-sublane reduction -> lane-dense (1, TB) output
        logp_ref[...] = jnp.sum(log_prob - correction, axis=0, keepdims=True)

    # tanh(a) = sign(a) * (1 - e) / (1 + e); approx reciprocal runs on the EUP
    sign_a = jnp.where(a >= 0.0, 1.0, -1.0)
    tanh_a = sign_a * (1.0 - e) * pl.reciprocal(1.0 + e, approx=True)
    act_ref[...] = act_limit * tanh_a


def squashed_gaussian_mlp_actor(obs, params, noise=None, *, act_limit=1.0,
                                deterministic=False, with_logprob=True,
                                batch_tile=512):
    """Forward pass of SquashedGaussianMLPActor.

    obs:    (B, obs_dim) float32
    noise:  (B, act_dim) float32 standard-normal sample (may be None when
            deterministic=True)
    params: PyTorch nn.Linear layout: w* are (out, in), b* are (out,)

    Returns (pi_action (B, act_dim), logp_pi (B,) or None).
    """
    B, obs_dim = obs.shape
    w1, b1 = params["w1"], params["b1"]
    w2, b2 = params["w2"], params["b2"]
    wmu, bmu = params["wmu"], params["bmu"]
    wls, bls = params["wls"], params["bls"]
    h1_dim, h2_dim = w1.shape[0], w2.shape[0]
    act_dim = wmu.shape[0]

    # Fused head weight and packed biases (one bias DMA instead of four).
    w_head = jnp.concatenate([wmu, wls], axis=0)            # (2*act_dim, h2)
    bias = jnp.concatenate([b1, b2, bmu, bls])[:, None]     # (h1+h2+2*act_dim, 1)
    n_bias = bias.shape[0]

    # Feature-major layout: batch on the 128-wide lane axis (lane-dense outputs).
    obs_t = obs.T                                            # (obs_dim, B)
    noise_t = None
    if not deterministic:
        if noise is None:
            raise ValueError("noise is required when deterministic=False")
        noise_t = noise.T                                    # (act_dim, B)

    # Batch tiling: whole batch as one block when small, otherwise 128-aligned
    # lane tiles -> pipelined DMAs and a "parallel" axis for v7x's 2 TCs.
    if B > batch_tile:
        tb = batch_tile
        b_padded = pl.cdiv(B, tb) * tb
        pad = b_padded - B
        if pad:
            obs_t = jnp.pad(obs_t, ((0, 0), (0, pad)))
            if noise_t is not None:
                noise_t = jnp.pad(noise_t, ((0, 0), (0, pad)))
    else:
        tb = B
        b_padded = B

    kernel = functools.partial(
        _actor_kernel,
        act_limit=float(act_limit),
        deterministic=bool(deterministic),
        with_logprob=bool(with_logprob),
        act_dim=act_dim, h1_dim=h1_dim, h2_dim=h2_dim)

    def const_spec(shape):
        return pl.BlockSpec(shape, lambda i: (0,) * len(shape))

    def batched_spec(rows):
        return pl.BlockSpec((rows, tb), lambda i: (0, i))

    in_arrays = [obs_t, w1, w2, w_head, bias]
    in_specs = [batched_spec(obs_dim), const_spec(w1.shape), const_spec(w2.shape),
                const_spec(w_head.shape), const_spec((n_bias, 1))]
    if not deterministic:
        in_arrays.append(noise_t)
        in_specs.append(batched_spec(act_dim))

    out_specs = [batched_spec(act_dim)]
    out_shape = [jax.ShapeDtypeStruct((act_dim, b_padded), jnp.float32)]
    if with_logprob:
        out_specs.append(batched_spec(1))
        out_shape.append(jax.ShapeDtypeStruct((1, b_padded), jnp.float32))

    outs = pl.pallas_call(
        kernel,
        grid=(b_padded // tb,),
        in_specs=in_specs,
        out_specs=out_specs,
        out_shape=out_shape,
        compiler_params=pltpu.CompilerParams(
            dimension_semantics=("parallel",)),
    )(*in_arrays)

    pi_action = outs[0][:, :B].T                             # (B, act_dim)
    logp_pi = outs[1][0, :B] if with_logprob else None
    return pi_action, logp_pi


def init_params(key, obs_dim, hidden_sizes, act_dim):
    """Deterministic synthetic init in PyTorch nn.Linear layout (out, in)."""
    h1, h2 = hidden_sizes
    keys = jax.random.split(key, 8)
    n = jax.random.normal
    return {
        "w1": 0.1 * n(keys[0], (h1, obs_dim), jnp.float32),
        "b1": 0.05 * n(keys[1], (h1,), jnp.float32),
        "w2": 0.1 * n(keys[2], (h2, h1), jnp.float32),
        "b2": 0.05 * n(keys[3], (h2,), jnp.float32),
        "wmu": 0.1 * n(keys[4], (act_dim, h2), jnp.float32),
        "bmu": 0.05 * n(keys[5], (act_dim,), jnp.float32),
        "wls": 0.1 * n(keys[6], (act_dim, h2), jnp.float32),
        "bls": 0.05 * n(keys[7], (act_dim,), jnp.float32),
    }


def ref_forward(obs, p, noise, act_limit, deterministic, with_logprob):
    """Pure-JAX reference mirroring the PyTorch module exactly."""
    h = jnp.maximum(obs @ p["w1"].T + p["b1"], 0.0)
    h = jnp.maximum(h @ p["w2"].T + p["b2"], 0.0)
    mu = h @ p["wmu"].T + p["bmu"]
    log_std = jnp.clip(h @ p["wls"].T + p["bls"], LOG_STD_MIN, LOG_STD_MAX)
    std = jnp.exp(log_std)
    a = mu if deterministic else mu + std * noise
    if with_logprob:
        lp = jnp.sum(-0.5 * ((a - mu) / std) ** 2 - log_std
                     - 0.5 * jnp.log(2.0 * jnp.pi), axis=-1)
        lp = lp - jnp.sum(2.0 * (jnp.log(2.0) - a - jax.nn.softplus(-2.0 * a)),
                          axis=-1)
    else:
        lp = None
    return act_limit * jnp.tanh(a), lp


if __name__ == "__main__":
    # Small shapes consistent with the module: obs_dim=16, hidden=(32,32),
    # act_dim=8, batch=8.
    B, obs_dim, act_dim = 8, 16, 8
    hidden_sizes = (32, 32)
    act_limit = 1.5

    key = jax.random.PRNGKey(0)
    k_obs, k_noise, k_params = jax.random.split(key, 3)
    obs = jax.random.normal(k_obs, (B, obs_dim), jnp.float32)
    noise = jax.random.normal(k_noise, (B, act_dim), jnp.float32)
    params = init_params(k_params, obs_dim, hidden_sizes, act_dim)

    # Stochastic path with log-prob (the main SAC path).
    pi_action, logp_pi = squashed_gaussian_mlp_actor(
        obs, params, noise, act_limit=act_limit,
        deterministic=False, with_logprob=True)
    jax.block_until_ready((pi_action, logp_pi))

    ref_a, ref_lp = ref_forward(obs, params, noise, act_limit, False, True)
    # action uses the EUP approx reciprocal for tanh -> slightly looser tolerance
    assert jnp.allclose(pi_action, ref_a, atol=5e-3, rtol=5e-3), \
        float(jnp.max(jnp.abs(pi_action - ref_a)))
    assert jnp.allclose(logp_pi, ref_lp, atol=1e-3, rtol=1e-3), \
        float(jnp.max(jnp.abs(logp_pi - ref_lp)))

    # Deterministic path without log-prob (evaluation path): the noise input and
    # the logp output are dropped from the pallas_call entirely.
    det_action, det_logp = squashed_gaussian_mlp_actor(
        obs, params, None, act_limit=act_limit,
        deterministic=True, with_logprob=False)
    jax.block_until_ready(det_action)
    ref_da, _ = ref_forward(obs, params, None, act_limit, True, False)
    assert det_logp is None
    assert jnp.allclose(det_action, ref_da, atol=5e-3, rtol=5e-3)

    print("KERNEL_OK")
</pallas_src>

<mosaic_0001>
module attributes {stable_mosaic.version = 11 : i64} {
  func.func @_actor_kernel(%arg0: i32, %arg1: memref<16x8xf32, #tpu.memory_space<vmem>>, %arg2: memref<32x16xf32, #tpu.memory_space<vmem>>, %arg3: memref<32x32xf32, #tpu.memory_space<vmem>>, %arg4: memref<16x32xf32, #tpu.memory_space<vmem>>, %arg5: memref<80x1xf32, #tpu.memory_space<vmem>>, %arg6: memref<8x8xf32, #tpu.memory_space<vmem>>, %arg7: memref<8x8xf32, #tpu.memory_space<vmem>>, %arg8: memref<1x8xf32, #tpu.memory_space<vmem>>) attributes {dimension_semantics = [#tpu.dimension_semantics<parallel>], iteration_bounds = array<i64: 1>, scalar_prefetch = 0 : i64, scratch_operands = 0 : i64, tpu.core_type = #tpu.core_type<tc>, window_params = [{transform_indices = @transform_0, window_bounds = array<i64: 16, 8>}, {pipeline_mode = #tpu.pipeline_mode<synchronous>, transform_indices = @transform_1, window_bounds = array<i64: 32, 16>}, {pipeline_mode = #tpu.pipeline_mode<synchronous>, transform_indices = @transform_2, window_bounds = array<i64: 32, 32>}, {pipeline_mode = #tpu.pipeline_mode<synchronous>, transform_indices = @transform_3, window_bounds = array<i64: 16, 32>}, {pipeline_mode = #tpu.pipeline_mode<synchronous>, transform_indices = @transform_4, window_bounds = array<i64: 80, 1>}, {transform_indices = @transform_5, window_bounds = array<i64: 8, 8>}, {transform_indices = @transform_6, window_bounds = array<i64: 8, 8>}, {transform_indices = @transform_7, window_bounds = array<i64: 1, 8>}]} {
    %c0 = arith.constant 0 : index
    %c0_0 = arith.constant 0 : index
    %0 = vector.load %arg1[%c0, %c0_0] : memref<16x8xf32, #tpu.memory_space<vmem>>, vector<16x8xf32>
    %c0_1 = arith.constant 0 : index
    %c0_2 = arith.constant 0 : index
    %1 = vector.load %arg5[%c0_1, %c0_2] : memref<80x1xf32, #tpu.memory_space<vmem>>, vector<32x1xf32>
    %c32 = arith.constant 32 : index
    %c0_3 = arith.constant 0 : index
    %2 = vector.load %arg5[%c32, %c0_3] : memref<80x1xf32, #tpu.memory_space<vmem>>, vector<32x1xf32>
    %c64 = arith.constant 64 : index
    %c0_4 = arith.constant 0 : index
    %3 = vector.load %arg5[%c64, %c0_4] : memref<80x1xf32, #tpu.memory_space<vmem>>, vector<16x1xf32>
    %c0_5 = arith.constant 0 : index
    %c0_6 = arith.constant 0 : index
    %4 = vector.load %arg2[%c0_5, %c0_6] : memref<32x16xf32, #tpu.memory_space<vmem>>, vector<32x16xf32>
    %cst = arith.constant dense<0.000000e+00> : vector<32x8xf32>
    %5 = tpu.matmul %4, %0, %cst {dimension_numbers = #tpu.dot_dimension_numbers<[1], [0], [0], [1], [0, 0, 1, 1], [], []>} : vector<32x16xf32>, vector<16x8xf32>, vector<32x8xf32> -> vector<32x8xf32>
    %6 = vector.broadcast %1 : vector<32x1xf32> to vector<32x8xf32>
    %7 = arith.addf %5, %6 : vector<32x8xf32>
    %cst_7 = arith.constant 0.000000e+00 : f32
    %8 = vector.broadcast %cst_7 : f32 to vector<32x8xf32>
    %9 = arith.maximumf %7, %8 : vector<32x8xf32>
    %c0_8 = arith.constant 0 : index
    %c0_9 = arith.constant 0 : index
    %10 = vector.load %arg3[%c0_8, %c0_9] : memref<32x32xf32, #tpu.memory_space<vmem>>, vector<32x32xf32>
    %cst_10 = arith.constant dense<0.000000e+00> : vector<32x8xf32>
    %11 = tpu.matmul %10, %9, %cst_10 {dimension_numbers = #tpu.dot_dimension_numbers<[1], [0], [0], [1], [0, 0, 1, 1], [], []>} : vector<32x32xf32>, vector<32x8xf32>, vector<32x8xf32> -> vector<32x8xf32>
    %12 = vector.broadcast %2 : vector<32x1xf32> to vector<32x8xf32>
    %13 = arith.addf %11, %12 : vector<32x8xf32>
    %cst_11 = arith.constant 0.000000e+00 : f32
    %14 = vector.broadcast %cst_11 : f32 to vector<32x8xf32>
    %15 = arith.maximumf %13, %14 : vector<32x8xf32>
    %c0_12 = arith.constant 0 : index
    %c0_13 = arith.constant 0 : index
    %16 = vector.load %arg4[%c0_12, %c0_13] : memref<16x32xf32, #tpu.memory_space<vmem>>, vector<16x32xf32>
    %cst_14 = arith.constant dense<0.000000e+00> : vector<16x8xf32>
    %17 = tpu.matmul %16, %15, %cst_14 {dimension_numbers = #tpu.dot_dimension_numbers<[1], [0], [0], [1], [0, 0, 1, 1], [], []>} : vector<16x32xf32>, vector<32x8xf32>, vector<16x8xf32> -> vector<16x8xf32>
    %18 = vector.broadcast %3 : vector<16x1xf32> to vector<16x8xf32>
    %19 = arith.addf %17, %18 : vector<16x8xf32>
    %20 = vector.extract_strided_slice %19 {offsets = [0, 0], sizes = [8, 8], strides = [1, 1]} : vector<16x8xf32> to vector<8x8xf32>
    %21 = vector.extract_strided_slice %19 {offsets = [8, 0], sizes = [8, 8], strides = [1, 1]} : vector<16x8xf32> to vector<8x8xf32>
    %cst_15 = arith.constant -2.000000e+01 : f32
    %cst_16 = arith.constant 2.000000e+00 : f32
    %22 = vector.broadcast %cst_15 : f32 to vector<8x8xf32>
    %23 = arith.maximumf %22, %21 : vector<8x8xf32>
    %24 = vector.broadcast %cst_16 : f32 to vector<8x8xf32>
    %25 = arith.minimumf %24, %23 : vector<8x8xf32>
    %26 = math.exp %25 : vector<8x8xf32>
    %c0_17 = arith.constant 0 : index
    %c0_18 = arith.constant 0 : index
    %27 = vector.load %arg6[%c0_17, %c0_18] : memref<8x8xf32, #tpu.memory_space<vmem>>, vector<8x8xf32>
    %28 = arith.mulf %26, %27 : vector<8x8xf32>
    %29 = arith.addf %20, %28 : vector<8x8xf32>
    %30 = math.absf %29 : vector<8x8xf32>
    %cst_19 = arith.constant -2.000000e+00 : f32
    %31 = vector.broadcast %cst_19 : f32 to vector<8x8xf32>
    %32 = arith.mulf %31, %30 : vector<8x8xf32>
    %33 = math.exp %32 : vector<8x8xf32>
    %c0_20 = arith.constant 0 : index
    %c0_21 = arith.constant 0 : index
    %34 = vector.load %arg6[%c0_20, %c0_21] : memref<8x8xf32, #tpu.memory_space<vmem>>, vector<8x8xf32>
    %cst_22 = arith.constant -5.000000e-01 : f32
    %35 = vector.broadcast %cst_22 : f32 to vector<8x8xf32>
    %36 = arith.mulf %35, %34 : vector<8x8xf32>
    %37 = arith.mulf %36, %34 : vector<8x8xf32>
    %38 = arith.subf %37, %25 : vector<8x8xf32>
    %cst_23 = arith.constant 0.918938517 : f32
    %39 = vector.broadcast %cst_23 : f32 to vector<8x8xf32>
    %40 = arith.subf %38, %39 : vector<8x8xf32>
    %cst_24 = arith.constant 1.000000e+00 : f32
    %41 = vector.broadcast %cst_24 : f32 to vector<8x8xf32>
    %42 = arith.addf %41, %33 : vector<8x8xf32>
    %43 = math.log %42 : vector<8x8xf32>
    %cst_25 = arith.constant -2.000000e+00 : f32
    %44 = vector.broadcast %cst_25 : f32 to vector<8x8xf32>
    %45 = arith.mulf %44, %29 : vector<8x8xf32>
    %cst_26 = arith.constant 0.000000e+00 : f32
    %46 = vector.broadcast %cst_26 : f32 to vector<8x8xf32>
    %47 = arith.maximumf %45, %46 : vector<8x8xf32>
    %48 = arith.addf %43, %47 : vector<8x8xf32>
    %cst_27 = arith.constant 0.693147182 : f32
    %49 = vector.broadcast %cst_27 : f32 to vector<8x8xf32>
    %50 = arith.subf %49, %29 : vector<8x8xf32>
    %51 = arith.subf %50, %48 : vector<8x8xf32>
    %cst_28 = arith.constant 2.000000e+00 : f32
    %52 = vector.broadcast %cst_28 : f32 to vector<8x8xf32>
    %53 = arith.mulf %52, %51 : vector<8x8xf32>
    %54 = arith.subf %40, %53 : vector<8x8xf32>
    %cst_29 = arith.constant dense<0.000000e+00> : vector<8xf32>
    %55 = vector.multi_reduction <add>, %54, %cst_29 [0] : vector<8x8xf32> to vector<8xf32>
    %56 = vector.shape_cast %55 : vector<8xf32> to vector<1x8xf32>
    %c0_30 = arith.constant 0 : index
    %c0_31 = arith.constant 0 : index
    %57 = vector.load %arg8[%c0_30, %c0_31] : memref<1x8xf32, #tpu.memory_space<vmem>>, vector<1x8xf32>
    tpu.vector_store %arg8[%c0_30, %c0_31], %56 {strides = array<i32>} : memref<1x8xf32, #tpu.memory_space<vmem>>, vector<1x8xf32>,
    %cst_32 = arith.constant 0.000000e+00 : f32
    %58 = vector.broadcast %cst_32 : f32 to vector<8x8xf32>
    %59 = arith.cmpf oge, %29, %58 : vector<8x8xf32>
    %cst_33 = arith.constant 1.000000e+00 : f32
    %cst_34 = arith.constant -1.000000e+00 : f32
    %60 = vector.broadcast %cst_33 : f32 to vector<8x8xf32>
    %61 = vector.broadcast %cst_34 : f32 to vector<8x8xf32>
    %62 = arith.select %59, %60, %61 : vector<8x8xi1>, vector<8x8xf32>
    %cst_35 = arith.constant 1.000000e+00 : f32
    %63 = vector.broadcast %cst_35 : f32 to vector<8x8xf32>
    %64 = arith.subf %63, %33 : vector<8x8xf32>
    %65 = arith.mulf %62, %64 : vector<8x8xf32>
    %cst_36 = arith.constant 1.000000e+00 : f32
    %66 = vector.broadcast %cst_36 : f32 to vector<8x8xf32>
    %67 = arith.addf %66, %33 : vector<8x8xf32>
    %68 = tpu.reciprocal %67 {approx = true} : vector<8x8xf32> -> vector<8x8xf32>
    %69 = arith.mulf %65, %68 : vector<8x8xf32>
    %cst_37 = arith.constant 1.500000e+00 : f32
    %70 = vector.broadcast %cst_37 : f32 to vector<8x8xf32>
    %71 = arith.mulf %70, %69 : vector<8x8xf32>
    %c0_38 = arith.constant 0 : index
    %c0_39 = arith.constant 0 : index
    %72 = vector.load %arg7[%c0_38, %c0_39] : memref<8x8xf32, #tpu.memory_space<vmem>>, vector<8x8xf32>
    tpu.vector_store %arg7[%c0_38, %c0_39], %71 {strides = array<i32>} : memref<8x8xf32, #tpu.memory_space<vmem>>, vector<8x8xf32>,
    return
  }
  func.func @transform_0(%arg0: i32) -> (i32, i32) {
    %c0_i32 = arith.constant 0 : i32
    %c0_i32_0 = arith.constant 0 : i32
    return %c0_i32, %arg0 : i32, i32
  }
  func.func @transform_1(%arg0: i32) -> (i32, i32) {
    %c0_i32 = arith.constant 0 : i32
    %c0_i32_0 = arith.constant 0 : i32
    %c0_i32_1 = arith.constant 0 : i32
    return %c0_i32, %c0_i32_0 : i32, i32
  }
  func.func @transform_2(%arg0: i32) -> (i32, i32) {
    %c0_i32 = arith.constant 0 : i32
    %c0_i32_0 = arith.constant 0 : i32
    %c0_i32_1 = arith.constant 0 : i32
    return %c0_i32, %c0_i32_0 : i32, i32
  }
  func.func @transform_3(%arg0: i32) -> (i32, i32) {
    %c0_i32 = arith.constant 0 : i32
    %c0_i32_0 = arith.constant 0 : i32
    %c0_i32_1 = arith.constant 0 : i32
    return %c0_i32, %c0_i32_0 : i32, i32
  }
  func.func @transform_4(%arg0: i32) -> (i32, i32) {
    %c0_i32 = arith.constant 0 : i32
    %c0_i32_0 = arith.constant 0 : i32
    %c0_i32_1 = arith.constant 0 : i32
    return %c0_i32, %c0_i32_0 : i32, i32
  }
  func.func @transform_5(%arg0: i32) -> (i32, i32) {
    %c0_i32 = arith.constant 0 : i32
    %c0_i32_0 = arith.constant 0 : i32
    return %c0_i32, %arg0 : i32, i32
  }
  func.func @transform_6(%arg0: i32) -> (i32, i32) {
    %c0_i32 = arith.constant 0 : i32
    %c0_i32_0 = arith.constant 0 : i32
    return %c0_i32, %arg0 : i32, i32
  }
  func.func @transform_7(%arg0: i32) -> (i32, i32) {
    %c0_i32 = arith.constant 0 : i32
    %c0_i32_0 = arith.constant 0 : i32
    return %c0_i32, %arg0 : i32, i32
  }
}

</mosaic_0001>

<bundles_post_ra>
// kernel: tpu_custom_call.1
= control target key start
LH: loop header
LB: loop body
LE: loop exit
PB: predicated region body
PF: predicated region fallthrough
CT: control target
= control target key end

     0   :  { %13 = vsyncpa [#allocation3], 0  ;;  %vm63_vm0 = vcmask 130048   ;;  %v603_v4 = vmov 0   ;;  %s752_s0 = inlined_call_operand.vmem [shape: f32[16,8], index: 0, kind: input, shape index: {}]   ;;  %s753_s1 = inlined_call_operand.vmem [shape: f32[32,16], index: 1, kind: input, shape index: {}]   ;;  %s754_s2 = inlined_call_operand.vmem [shape: f32[32,32], index: 2, kind: input, shape index: {}]   ;;  %s755_s3 = inlined_call_operand.vmem [shape: f32[16,32], index: 3, kind: input, shape index: {}]   ;;  %s756_s4 = inlined_call_operand.vmem [shape: f32[80,1], index: 4, kind: input, shape index: {}]   ;;  %s757_s5 = inlined_call_operand.vmem [shape: f32[8,8], index: 5, kind: input, shape index: {}]   ;;  %s758_s6 = inlined_call_operand.hbm [shape: f32[8,8], index: 6, kind: output, shape index: {0}]   ;;  %s759_s7 = inlined_call_operand.hbm [shape: f32[1,8], index: 7, kind: output, shape index: {1}]  }
   0x1   :  { %v27_v0 = vld [vmem:[%s752_s0] sm:$0xff]  ;;  %v28_v1 = vld [vmem:[%s752_s0 + $0x8] sm:$0xff]  ;;  %545 = vset.pattern.permute.xlu0 %v603_v4  ;;  %546 = vset.pattern.permute.xlu1 %v603_v4  ;;  %v31_v6 = vld [vmem:[%s756_s4 + $0x10] sm:$0xff] }
   0x2   :  { %v39_v2 = vld [vmem:[%s753_s1] sm:$0xff]  ;;  %v521_v3 = vpack.c.bf16 %v28_v1, %v27_v0  ;;  %v40_v7 = vld [vmem:[%s753_s1 + $0x8] sm:$0xff]  ;;  %55 = vperm.xlu1 %546, %v31_v6   ;;  %v41_v9 = vld [vmem:[%s753_s1 + $0x10] sm:$0xff] }
   0x3   :  { %490 = vmatprep.mubr.msk.f32.mxu0 %vm63_vm0, %v39_v2  ;;  %v29_v5 = vld [vmem:[%s756_s4] sm:$0xff]  ;;  %v30_v8 = vld [vmem:[%s756_s4 + $0x8] sm:$0xff]  ;;  %v32_v10 = vld [vmem:[%s756_s4 + $0x18] sm:$0xff] }
   0x4   :  { %522 = vmatprep.subr.bf16.mxu0 %v521_v3  ;;  %45 = vperm.xlu0 %545, %v29_v5  }
   0x5   :  { %524 = vmatpush3.bf16.msra.mxu0 %v521_v3 }
   0x6   :  { %14 = vsyncpa [#allocation5], 0  ;;  %v42_v11 = vld [vmem:[%s753_s1 + $0x18] sm:$0xff]  ;;  %60 = vperm.xlu1 %546, %v32_v10   ;;  %v33_v12 = vld [vmem:[%s756_s4 + $0x20] sm:$0xff]  ;;  %vm189_vm1 = vcmask 261120   ;;  %vm409_vm3 = vcmask 64512  }
   0x7   :  { %v34_v13 = vld [vmem:[%s756_s4 + $0x28] sm:$0xff]  ;;  %v35_v14 = vld [vmem:[%s756_s4 + $0x30] sm:$0xff]  ;;  %v36_v15 = vld [vmem:[%s756_s4 + $0x38] sm:$0xff] }
   0x8   :  { %491 = vmatmul.mubr.msk.f32.vlgmr.msra.gmra.mrb[0].mxu0 %vm63_vm0, %v40_v7  ;;  %50 = vperm.xlu0 %545, %v30_v8   ;;  %v38_v16 = vld [vmem:[%s756_s4 + $0x48] sm:$0xff]  ;;  %v37_v17 = vld [vmem:[%s756_s4 + $0x40] sm:$0xff]  ;;  %v167_v38 = vld [vmem:[%s754_s2 + $0x10] sm:$0xff] }
   0x9   :  { %493 = vmatprep.mubr.msk.f32.mxu0 %vm63_vm0, %v41_v9  ;;  %v165_v18 = vld [vmem:[%s754_s2] sm:$0xff]  ;;  %v166_v37 = vld [vmem:[%s754_s2 + $0x8] sm:$0xff]  ;;  %v168_v39 = vld [vmem:[%s754_s2 + $0x18] sm:$0xff] }
   0xa   :  { %176 = vperm.xlu1 %546, %v34_v13   ;;  %504 = vmatprep.mubr.msk.f32.mxu1 %vm189_vm1, %v165_v18  ;;  %v291_v40 = vld [vmem:[%s755_s3] sm:$0xff]  ;;  %v292_v59 = vld [vmem:[%s755_s3 + $0x8] sm:$0xff]  ;;  %v604_v18 = vmov -1.0   ;;  %s605_s3 = smov [#allocation2]  }
   0xb   :  { %v388_v5 = vld [vmem:[%s757_s5] sm:$0xff]  ;;  %s433_s5 = sshll.u32 %s605_s3, 4  ;;  %s434_s5 = int_to_ptr.vmem [resolvable:$true] %s433_s5 }
   0xc   :  { %494 = vmatmul.mubr.msk.f32.gmra.mrb[2].mxu0 %vm63_vm0, %v42_v11  ;;  %171 = vperm.xlu0 %545, %v33_v12   ;;  %s555_s19 = scalar_lea.vmem %s434_s5, 128  ;;  %p560_p1 = scmp.lt.s32.totalorder %s434_s5, %s434_s5 }
   0xd   :  { %518 = vmatprep.mubr.msk.f32.mxu0 %vm189_vm1, %v291_v40  ;;  %p556_p0 = scmp.ne.s32.totalorder %s434_s5, %s555_s19  ;;  %p561_p2 = scmp.lt.s32.totalorder %s555_s19, %s555_s19 }
   0xe   :  { %186 = vperm.xlu1 %546, %v36_v15  }
   0xf   :  { %p562_p3 = por %p561_p2, %p560_p1 }
  0x10   :  { %181 = vperm.xlu0 %545, %v35_v14   ;;  %v395_v14 = vmul.f32 -0.5, %v388_v5 }
  0x11   :  { %p563_p4 = pnand %p562_p3, %p556_p0 }
  0x12   :  { %295 = vperm.xlu1 %546, %v37_v17   ;;  %v396_v17 = vmul.f32 %v395_v14, %v388_v5 }
  0x14   :  { %300 = vperm.xlu0 %545, %v38_v16  }
  0x81   :  { %v56_v20 = vpop.permute.xlu1 %55 }
  0x83   :  { %v46_v19 = vpop.permute.xlu0 %45 }
  0x85   :  { %v61_v27 = vpop.permute.xlu1 %60 }
  0x87   :  { %v51_v21 = vpop.permute.xlu0 %50 }
  0x89   :  { %v177_v41 = vpop.permute.xlu1 %176 }
  0x8b   :  { %v172_v42 = vpop.permute.xlu0 %171 }
  0x8d   :  { %v187_v48 = vpop.permute.xlu1 %186 }
  0x8f   :  { %v182_v51 = vpop.permute.xlu0 %181 }
  0x91   :  { %v296_v4 = vpop.permute.xlu1 %295 }
  0x93   :  { %v301_v60 = vpop.permute.xlu0 %300 }
  0xdb   :  { %v492_v22 = vpop.f32.mrb[0].mxu0 }
  0xdc   :  { %v148_v23 = vadd.f32 %v492_v22, %v51_v21  ;;  %v142_v24 = vpop.f32.mrb[1].mxu0 }
  0xdd   :  { %v143_v25 = vadd.f32 %v142_v24, %v46_v19 }
  0xde   :  { %v162_v26 = vmax.f32 %v148_v23, 0.0 }
  0xdf   :  { %v161_v28 = vmax.f32 %v143_v25, 0.0  ;;  %v495_v29 = vpop.f32.mrb[2].mxu0 }
  0xe0   :  { %v158_v30 = vadd.f32 %v495_v29, %v61_v27  ;;  %v152_v31 = vpop.f32.mrb[3].mxu0 }
  0xe1   :  { %v153_v32 = vadd.f32 %v152_v31, %v56_v20  ;;  %v525_v33 = vpack.c.bf16 %v162_v26, %v161_v28 }
  0xe2   :  { %v164_v34 = vmax.f32 %v158_v30, 0.0 }
  0xe3   :  { %v163_v35 = vmax.f32 %v153_v32, 0.0  ;;  %526 = vmatprep.subr.bf16.mxu1 %v525_v33 }
  0xe4   :  { %528 = vmatpush3.bf16.msra.mxu1 %v525_v33 }
  0xe5   :  { %v529_v36 = vpack.c.bf16 %v164_v34, %v163_v35 }
  0xe7   :  { %530 = vmatprep.subr.bf16.mxu1 %v529_v36 }
  0xe8   :  { %532 = vmatpush3.bf16.msra.mxu1 %v529_v36 }
  0xeb   :  { %505 = vmatmul.mubr.msk.f32.vlgmr.msra.gmra.mrb[0].mxu1 %vm189_vm1, %v166_v37 }
  0xec   :  { %507 = vmatprep.mubr.msk.f32.mxu1 %vm189_vm1, %v167_v38 }
  0xef   :  { %508 = vmatmul.mubr.msk.f32.gmra.mrb[2].mxu1 %vm189_vm1, %v168_v39 }
 0x1be   :  { %v506_v43 = vpop.f32.mrb[0].mxu1 }
 0x1bf   :  { %v274_v44 = vadd.f32 %v506_v43, %v177_v41  ;;  %v268_v45 = vpop.f32.mrb[1].mxu1 }
 0x1c0   :  { %v269_v46 = vadd.f32 %v268_v45, %v172_v42 }
 0x1c1   :  { %v288_v47 = vmax.f32 %v274_v44, 0.0 }
 0x1c2   :  { %v287_v49 = vmax.f32 %v269_v46, 0.0  ;;  %v509_v50 = vpop.f32.mrb[2].mxu1 }
 0x1c3   :  { %v284_v52 = vadd.f32 %v509_v50, %v187_v48  ;;  %v278_v53 = vpop.f32.mrb[3].mxu1 }
 0x1c4   :  { %v533_v54 = vpack.c.bf16 %v288_v47, %v287_v49  ;;  %v279_v55 = vadd.f32 %v278_v53, %v182_v51 }
 0x1c5   :  { %v290_v56 = vmax.f32 %v284_v52, 0.0 }
 0x1c6   :  { %v289_v57 = vmax.f32 %v279_v55, 0.0  ;;  %534 = vmatprep.subr.bf16.mxu0 %v533_v54 }
 0x1c7   :  { %536 = vmatpush3.bf16.msra.mxu0 %v533_v54 }
 0x1c8   :  { %v537_v58 = vpack.c.bf16 %v290_v56, %v289_v57 }
 0x1ca   :  { %538 = vmatprep.subr.bf16.mxu0 %v537_v58 }
 0x1cb   :  { %540 = vmatpush3.bf16.msra.mxu0 %v537_v58 }
 0x1ce   :  { %519 = vmatmul.mubr.msk.f32.vlgmr.msra.gmra.mrb[4].mxu0 %vm189_vm1, %v292_v59 }
 0x2a1   :  { %v520_v61 = vpop.f32.mrb[4].mxu0 }
 0x2a2   :  { %v381_v62 = vadd.f32 %v520_v61, %v301_v60  ;;  %v375_v63 = vpop.f32.mrb[5].mxu0 }
 0x2a3   :  { %v376_v6 = vadd.f32 %v375_v63, %v296_v4 }
 0x2a4   :  { %v384_v0 = vmax.f32 %v381_v62, -20.0 }
 0x2a6   :  { %v385_v1 = vmin.f32 %v384_v0, 2.0 }
 0x2a8   :  { %v386_v2 = vmul.f32 1.442695, %v385_v1  ;;  %v397_v26 = vsub.f32 %v396_v17, %v385_v1 }
 0x2aa   :  { %547 = vpow2.f32 %v386_v2  ;;  %v465_v31 = vadd.f32 -0.9189385, %v397_v26 }
 0x2b4   :  { %v548_v3 = vpop.eup %547 }
 0x2b5   :  { %v389_v7 = vmul.f32 %v548_v3, %v388_v5 }
 0x2b7   :  { %v390_v8 = vadd.f32 %v389_v7, %v376_v6 }
 0x2b9   :  { %v391_v9 = vand.u32 2147483647, %v390_v8  ;;  %vm419_vm2 = vcmp.ge.f32.partialorder %v390_v8, 0.0  ;;  %v402_v16 = vmul.f32 -2.0, %v390_v8  ;;  %v405_v28 = vsub.f32 0.6931472, %v390_v8 }
 0x2ba   :  { %v420_v19 = vsel %vm419_vm2, 1.0, %v604_v18 }
 0x2bb   :  { %v392_v10 = vmul.f32 -2.0, %v391_v9  ;;  %v403_v24 = vmax.f32 %v402_v16, 0.0 }
 0x2bd   :  { %v393_v11 = vmul.f32 1.442695, %v392_v10 }
 0x2bf   :  { %549 = vpow2.f32 %v393_v11 }
 0x2c9   :  { %v550_v12 = vpop.eup %549 }
 0x2ca   :  { %v399_v13 = vadd.f32 1.0, %v550_v12  ;;  %v421_v15 = vsub.f32 1.0, %v550_v12 }
 0x2cc   :  { %551 = vlog2.f32 %v399_v13  ;;  %v422_v21 = vmul.f32 %v421_v15, %v420_v19 }
 0x2cd   :  { %553 = vrcp.f32 %v399_v13 }
 0x2d6   :  { %v552_v20 = vpop.eup %551 }
 0x2d7   :  { %v554_v22 = vpop.eup %553  ;;  %v401_v23 = vmul.f32 0.6931472, %v552_v20 }
 0x2d8   :  { %v424_v25 = vmul.f32 %v554_v22, %v422_v21 }
 0x2d9   :  { %v404_v27 = vadd.f32 %v403_v24, %v401_v23 }
 0x2da   :  { %v425_v29 = vmul.f32 1.5, %v424_v25 }
 0x2db   :  { %v406_v30 = vsub.f32 %v405_v28, %v404_v27 }
 0x2dc   :  { %426 = vst.msk [vmem:[#allocation2] sm:$0xff] %vm409_vm3, %v425_v29 }
 0x2dd   :  { %v407_v32 = vmul.f32 2.0, %v406_v30 }
 0x2de   :  { %566 = shalt.err (!%p563_p4)
}
 0x2df   :  { %s567_s22 = scalar_lea.hbm %s758_s6, 128 }
 0x2e0   :  { %p568_p5 = scmp.ne.s32.totalorder %s758_s6, %s567_s22  ;;  %p571_p6 = scmp.lt.u32.totalorder %s567_s22, %s758_s6 }
 0x2e2   :  { %p573_p7 = pnand %p571_p6, %p568_p5 }
 0x2e4   :  { %576 = shalt.err (!%p573_p7)
}
 0x2e5   :  { %436 = dma.vmem_to_hbm [thread:$0]  %s434_s5, 128, %s758_s6, [#allocation3]   ;;  %v408_v33 = vsub.f32 %v465_v31, %v407_v32  ;;  %vm417_vm4 = vcmask 57344  }
 0x2e6   :  { %s606_s28 = smov [#allocation4]  }
 0x2e7   :  { %v410_v34 = vsel %vm409_vm3, %v408_v33, 0.0  ;;  %s443_s29 = sshll.u32 %s606_s28, 4  ;;  %s444_s29 = int_to_ptr.vmem [resolvable:$true] %s443_s29 }
 0x2e8   :  { %v411_v35 = vrot.slane %v410_v34, 4  ;;  %s577_s30 = scalar_lea.vmem %s444_s29, 16  ;;  %s581_s8 = scalar_lea.vmem %s444_s29, 32 }
 0x2e9   :  { %p578_p8 = scmp.ne.s32.totalorder %s444_s29, %s577_s30  ;;  %p582_p9 = scmp.lt.s32.totalorder %s444_s29, %s444_s29 }
 0x2ea   :  { %v412_v36 = vadd.f32 %v411_v35, %v410_v34  ;;  %p583_p10 = scmp.lt.s32.totalorder %s581_s8, %s577_s30 }
 0x2ec   :  { %v413_v37 = vrot.slane %v412_v36, 2  ;;  %p584_p11 = por %p583_p10, %p582_p9 }
 0x2ee   :  { %v414_v38 = vadd.f32 %v413_v37, %v412_v36  ;;  %p585_p12 = pnand %p584_p11, %p578_p8 }
 0x2f0   :  { %v415_v39 = vrot.slane %v414_v38, 1 }
 0x2f2   :  { %v416_v40 = vadd.f32 %v415_v39, %v414_v38 }
 0x2f4   :  { %418 = vst.msk [vmem:[#allocation4] sm:$0x1] %vm417_vm4, %v416_v40 }
 0x2f5   :  { %588 = shalt.err (!%p585_p12)
}
 0x2f6   :  { %s589_s4 = scalar_lea.hbm %s759_s7, 16 }
 0x2f7   :  { %p590_p13 = scmp.ne.s32.totalorder %s759_s7, %s589_s4  ;;  %p593_p0 = scmp.lt.u32.totalorder %s589_s4, %s759_s7 }
 0x2f9   :  { %p595_p1 = pnand %p593_p0, %p590_p13 }
 0x2fb   :  { %598 = shalt.err (!%p595_p1)
}
 0x2fc   :  { %446 = dma.vmem_to_hbm [thread:$0]  %s444_s29, 16, %s759_s7, [#allocation5]  }
 0x2fd   :  { %599 = dma.done.wait [#allocation3], 128  }
 0x2fe   :  { %600 = vsyncadd [#allocation3], 4294967168 }
 0x2ff   :  { %601 = dma.done.wait [#allocation5], 16  }
 0x300   :  { %602 = vsyncadd [#allocation5], 4294967280 }
 0x301   :  { %453 = vsyncpa [#allocation3], 1 }
 0x302   :  { %454 = vsyncpa [#allocation5], 1 }

</bundles_post_ra>
